<compile_context>
chip_gen: v7x
topology: tpu7x:2x2x1
jax: 0.10.0
libtpu: 0.0.40
codegen_flags: <defaults>
</compile_context>

<pallas_src>
import jax
import jax.numpy as jnp
from jax.experimental import pallas as pl
from jax.experimental.pallas import tpu as pltpu


def _choose_tokens_per_block(n: int) -> int:
    # Bigger blocks amortize per-grid-step overhead; small inputs stay at the
    # minimum sublane-aligned tile so padding does not add wasted row copies.
    for cand in (64, 32, 16, 8):
        if n >= cand:
            return cand
    return 8


def _make_embedding_gather_kernel(tokens_per_block: int):
    def _kernel(tok_ref, table_ref, out_ref):
        # tok_ref  : SMEM (n_pad,) int32          -- all token ids (scalar prefetch)
        # table_ref: VMEM (V, D)                  -- full embedding table, resident
        # out_ref  : VMEM (tokens_per_block, D)   -- lane-dense output tile
        base = pl.program_id(0) * tokens_per_block
        for r in range(tokens_per_block):       # static unroll (small trip count)
            idx = tok_ref[base + r]              # scalar read from SMEM
            out_ref[pl.ds(r, 1), :] = table_ref[pl.ds(idx, 1), :]

    return _kernel


def embeddings_extractor_forward(tokens, embedding_table):
    """Pallas equivalent of EmbeddingsExtractor.forward.

    tokens: int array (or Python list) of token ids, any shape -> flattened.
    embedding_table: (vocab, embed_dim) float table (the hooked nn.Embedding
    weight; with embedding_layer=None the module picks its first/only one).
    Returns (n_tokens, embed_dim) embeddings.
    """
    tokens = jnp.asarray(tokens, jnp.int32).reshape(-1)     # tokens.view(-1)
    n = int(tokens.shape[0])
    vocab, dim = embedding_table.shape

    # Clamp to valid rows: OOB VMEM reads on TPU are unchecked, so guard here.
    tokens = jnp.clip(tokens, 0, vocab - 1)

    # Pad the token count up to a block-aligned tile; sliced off afterwards.
    tpb = _choose_tokens_per_block(n)
    n_pad = pl.cdiv(n, tpb) * tpb
    tok_padded = jnp.zeros((n_pad,), jnp.int32).at[:n].set(tokens)

    # VMEM budget: resident table (+ double-buffer slack for the pipelined
    # output tiles) with headroom, capped at 64 MiB (valid on v5e/v6e/v7x).
    elem_bytes = jnp.dtype(embedding_table.dtype).itemsize
    table_bytes = int(vocab) * int(dim) * elem_bytes
    out_block_bytes = tpb * int(dim) * elem_bytes
    vmem_needed = 2 * table_bytes + 4 * out_block_bytes + (1 << 20)
    vmem_limit = int(min(max(vmem_needed, 32 << 20), 64 << 20))

    # TODO(synk): for very large vocabularies the resident-in-VMEM table should
    # become a per-row data-dependent gather (pl.Element / scalar-prefetch
    # index_map) so only the needed rows are DMA'd from HBM.
    out = pl.pallas_call(
        _make_embedding_gather_kernel(tpb),
        out_shape=jax.ShapeDtypeStruct((n_pad, dim), embedding_table.dtype),
        grid_spec=pltpu.PrefetchScalarGridSpec(
            num_scalar_prefetch=1,                 # tok_padded -> SMEM
            grid=(n_pad // tpb,),
            in_specs=[
                # Whole table, constant block index => fetched once, stays in VMEM.
                pl.BlockSpec((vocab, dim), lambda i, tok: (0, 0)),
            ],
            out_specs=pl.BlockSpec((tpb, dim), lambda i, tok: (i, 0)),
        ),
        compiler_params=pltpu.CompilerParams(
            dimension_semantics=("parallel",),     # token blocks are independent
            vmem_limit_bytes=vmem_limit,
        ),
    )(tok_padded, embedding_table)

    return out[:n]


def make_embedding_table(vocab=256, dim=128):
    """Deterministic synthetic nn.Embedding weight (no checkpoint loading)."""
    k = jax.random.PRNGKey(0)
    return 0.02 * jax.random.normal(k, (vocab, dim), jnp.float32)


if __name__ == "__main__":
    VOCAB, DIM, SEQ = 256, 128, 8

    key = jax.random.PRNGKey(0)
    k_tab, k_tok = jax.random.split(key)
    table = 0.02 * jax.random.normal(k_tab, (VOCAB, DIM), jnp.float32)
    tokens = jax.random.randint(k_tok, (SEQ,), 0, VOCAB, jnp.int32)

    embs = embeddings_extractor_forward(tokens, table)
    embs = jax.block_until_ready(embs)

    # Pure-JAX reference: a row gather.
    ref = jnp.take(table, tokens, axis=0)
    assert embs.shape == (SEQ, DIM)
    assert bool(jnp.array_equal(embs, ref)), "embedding gather mismatch"

    # The module returns embeddings.tolist(); mirror that on the host.
    embs_list = embs.tolist()
    assert len(embs_list) == SEQ and len(embs_list[0]) == DIM
    print("KERNEL_OK")
</pallas_src>

<mosaic_0001>
module attributes {stable_mosaic.version = 11 : i64} {
  func.func @_kernel(%arg0: i32, %arg1: memref<8xi32, #tpu.memory_space<smem>>, %arg2: memref<256x128xf32, #tpu.memory_space<vmem>>, %arg3: memref<8x128xf32, #tpu.memory_space<vmem>>) attributes {dimension_semantics = [#tpu.dimension_semantics<parallel>], iteration_bounds = array<i64: 1>, scalar_prefetch = 1 : i64, scratch_operands = 0 : i64, tpu.core_type = #tpu.core_type<tc>, window_params = [{pipeline_mode = #tpu.pipeline_mode<synchronous>, transform_indices = @transform_0, window_bounds = array<i64: 256, 128>}, {transform_indices = @transform_1, window_bounds = array<i64: 8, 128>}]} {
    %c8_i32 = arith.constant 8 : i32
    %0 = arith.muli %arg0, %c8_i32 : i32
    %c0_i32 = arith.constant 0 : i32
    %1 = arith.addi %0, %c0_i32 : i32
    %2 = arith.index_cast %1 : i32 to index
    %3 = memref.load %arg1[%2] : memref<8xi32, #tpu.memory_space<smem>>
    %4 = arith.index_cast %3 : i32 to index
    %c0 = arith.constant 0 : index
    %5 = vector.load %arg2[%4, %c0] : memref<256x128xf32, #tpu.memory_space<vmem>>, vector<1x128xf32>
    %c0_0 = arith.constant 0 : index
    %c0_1 = arith.constant 0 : index
    %6 = vector.load %arg3[%c0_0, %c0_1] : memref<8x128xf32, #tpu.memory_space<vmem>>, vector<1x128xf32>
    tpu.vector_store %arg3[%c0_0, %c0_1], %5 {strides = array<i32>} : memref<8x128xf32, #tpu.memory_space<vmem>>, vector<1x128xf32>,
    %c1_i32 = arith.constant 1 : i32
    %7 = arith.addi %0, %c1_i32 : i32
    %8 = arith.index_cast %7 : i32 to index
    %9 = memref.load %arg1[%8] : memref<8xi32, #tpu.memory_space<smem>>
    %10 = arith.index_cast %9 : i32 to index
    %c0_2 = arith.constant 0 : index
    %11 = vector.load %arg2[%10, %c0_2] : memref<256x128xf32, #tpu.memory_space<vmem>>, vector<1x128xf32>
    %c1 = arith.constant 1 : index
    %c0_3 = arith.constant 0 : index
    %12 = vector.load %arg3[%c1, %c0_3] : memref<8x128xf32, #tpu.memory_space<vmem>>, vector<1x128xf32>
    tpu.vector_store %arg3[%c1, %c0_3], %11 {strides = array<i32>} : memref<8x128xf32, #tpu.memory_space<vmem>>, vector<1x128xf32>,
    %c2_i32 = arith.constant 2 : i32
    %13 = arith.addi %0, %c2_i32 : i32
    %14 = arith.index_cast %13 : i32 to index
    %15 = memref.load %arg1[%14] : memref<8xi32, #tpu.memory_space<smem>>
    %16 = arith.index_cast %15 : i32 to index
    %c0_4 = arith.constant 0 : index
    %17 = vector.load %arg2[%16, %c0_4] : memref<256x128xf32, #tpu.memory_space<vmem>>, vector<1x128xf32>
    %c2 = arith.constant 2 : index
    %c0_5 = arith.constant 0 : index
    %18 = vector.load %arg3[%c2, %c0_5] : memref<8x128xf32, #tpu.memory_space<vmem>>, vector<1x128xf32>
    tpu.vector_store %arg3[%c2, %c0_5], %17 {strides = array<i32>} : memref<8x128xf32, #tpu.memory_space<vmem>>, vector<1x128xf32>,
    %c3_i32 = arith.constant 3 : i32
    %19 = arith.addi %0, %c3_i32 : i32
    %20 = arith.index_cast %19 : i32 to index
    %21 = memref.load %arg1[%20] : memref<8xi32, #tpu.memory_space<smem>>
    %22 = arith.index_cast %21 : i32 to index
    %c0_6 = arith.constant 0 : index
    %23 = vector.load %arg2[%22, %c0_6] : memref<256x128xf32, #tpu.memory_space<vmem>>, vector<1x128xf32>
    %c3 = arith.constant 3 : index
    %c0_7 = arith.constant 0 : index
    %24 = vector.load %arg3[%c3, %c0_7] : memref<8x128xf32, #tpu.memory_space<vmem>>, vector<1x128xf32>
    tpu.vector_store %arg3[%c3, %c0_7], %23 {strides = array<i32>} : memref<8x128xf32, #tpu.memory_space<vmem>>, vector<1x128xf32>,
    %c4_i32 = arith.constant 4 : i32
    %25 = arith.addi %0, %c4_i32 : i32
    %26 = arith.index_cast %25 : i32 to index
    %27 = memref.load %arg1[%26] : memref<8xi32, #tpu.memory_space<smem>>
    %28 = arith.index_cast %27 : i32 to index
    %c0_8 = arith.constant 0 : index
    %29 = vector.load %arg2[%28, %c0_8] : memref<256x128xf32, #tpu.memory_space<vmem>>, vector<1x128xf32>
    %c4 = arith.constant 4 : index
    %c0_9 = arith.constant 0 : index
    %30 = vector.load %arg3[%c4, %c0_9] : memref<8x128xf32, #tpu.memory_space<vmem>>, vector<1x128xf32>
    tpu.vector_store %arg3[%c4, %c0_9], %29 {strides = array<i32>} : memref<8x128xf32, #tpu.memory_space<vmem>>, vector<1x128xf32>,
    %c5_i32 = arith.constant 5 : i32
    %31 = arith.addi %0, %c5_i32 : i32
    %32 = arith.index_cast %31 : i32 to index
    %33 = memref.load %arg1[%32] : memref<8xi32, #tpu.memory_space<smem>>
    %34 = arith.index_cast %33 : i32 to index
    %c0_10 = arith.constant 0 : index
    %35 = vector.load %arg2[%34, %c0_10] : memref<256x128xf32, #tpu.memory_space<vmem>>, vector<1x128xf32>
    %c5 = arith.constant 5 : index
    %c0_11 = arith.constant 0 : index
    %36 = vector.load %arg3[%c5, %c0_11] : memref<8x128xf32, #tpu.memory_space<vmem>>, vector<1x128xf32>
    tpu.vector_store %arg3[%c5, %c0_11], %35 {strides = array<i32>} : memref<8x128xf32, #tpu.memory_space<vmem>>, vector<1x128xf32>,
    %c6_i32 = arith.constant 6 : i32
    %37 = arith.addi %0, %c6_i32 : i32
    %38 = arith.index_cast %37 : i32 to index
    %39 = memref.load %arg1[%38] : memref<8xi32, #tpu.memory_space<smem>>
    %40 = arith.index_cast %39 : i32 to index
    %c0_12 = arith.constant 0 : index
    %41 = vector.load %arg2[%40, %c0_12] : memref<256x128xf32, #tpu.memory_space<vmem>>, vector<1x128xf32>
    %c6 = arith.constant 6 : index
    %c0_13 = arith.constant 0 : index
    %42 = vector.load %arg3[%c6, %c0_13] : memref<8x128xf32, #tpu.memory_space<vmem>>, vector<1x128xf32>
    tpu.vector_store %arg3[%c6, %c0_13], %41 {strides = array<i32>} : memref<8x128xf32, #tpu.memory_space<vmem>>, vector<1x128xf32>,
    %c7_i32 = arith.constant 7 : i32
    %43 = arith.addi %0, %c7_i32 : i32
    %44 = arith.index_cast %43 : i32 to index
    %45 = memref.load %arg1[%44] : memref<8xi32, #tpu.memory_space<smem>>
    %46 = arith.index_cast %45 : i32 to index
    %c0_14 = arith.constant 0 : index
    %47 = vector.load %arg2[%46, %c0_14] : memref<256x128xf32, #tpu.memory_space<vmem>>, vector<1x128xf32>
    %c7 = arith.constant 7 : index
    %c0_15 = arith.constant 0 : index
    %48 = vector.load %arg3[%c7, %c0_15] : memref<8x128xf32, #tpu.memory_space<vmem>>, vector<1x128xf32>
    tpu.vector_store %arg3[%c7, %c0_15], %47 {strides = array<i32>} : memref<8x128xf32, #tpu.memory_space<vmem>>, vector<1x128xf32>,
    return
  }
  func.func @transform_0(%arg0: i32, %arg1: memref<8xi32, #tpu.memory_space<smem>>) -> (i32, i32) {
    %c0_i32 = arith.constant 0 : i32
    %c0_i32_0 = arith.constant 0 : i32
    %c0_i32_1 = arith.constant 0 : i32
    return %c0_i32, %c0_i32_0 : i32, i32
  }
  func.func @transform_1(%arg0: i32, %arg1: memref<8xi32, #tpu.memory_space<smem>>) -> (i32, i32) {
    %c0_i32 = arith.constant 0 : i32
    %c0_i32_0 = arith.constant 0 : i32
    return %arg0, %c0_i32 : i32, i32
  }
}

</mosaic_0001>

<bundles_post_ra>
// kernel: tpu_custom_call.1
= control target key start
LH: loop header
LB: loop body
LE: loop exit
PB: predicated region body
PF: predicated region fallthrough
CT: control target
= control target key end

     0   :  { %s226_s0 = inlined_call_operand.hbm [shape: s32[8], index: 0, kind: input, shape index: {}]   ;;  %s227_s1 = inlined_call_operand.hbm [shape: f32[256,128], index: 1, kind: input, shape index: {}]   ;;  %s228_s2 = inlined_call_operand.hbm [shape: f32[8,128], index: 2, kind: output, shape index: {}]  }
   0x1   :  { %s103_s11 = scalar_lea.hbm %s226_s0, 16 }
   0x2   :  { %p104_p0 = scmp.ne.s32.totalorder %s226_s0, %s103_s11  ;;  %p107_p1 = scmp.lt.u32.totalorder %s103_s11, %s226_s0 }
   0x4   :  { %p109_p2 = pnand %p107_p1, %p104_p0 }
   0x6   :  { %112 = shalt.err (!%p109_p2)  }
   0x7   :  { %s163_s16 = smov [#allocation3]  }
   0x8   :  { %8 = dma.hbm_to_smem %s226_s0, 16, %s163_s16, [#allocation2] }
   0x9   :  { %157 = dma.done.wait [#allocation2], 16 }
   0xa   :  { %158 = vsyncadd [#allocation2], 4294967280 }
   0xb   :  { %10 = sfence }
   0xc   :  { %11 = vsyncpa [#allocation5], 0 }
   0xd   :  { %12 = vsyncpa [#allocation6], 0  ;;  %s164_s19 = smov [#allocation4]   ;;  %s113_s23 = scalar_lea.hbm %s227_s1, 4096 }
   0xe   :  { %s18_s20 = sshll.u32 %s164_s19, 4  ;;  %p114_p3 = scmp.ne.s32.totalorder %s227_s1, %s113_s23  ;;  %s19_s20 = int_to_ptr.vmem [resolvable:$true] %s18_s20 }
   0xf   :  { %p117_p4 = scmp.lt.u32.totalorder %s113_s23, %s227_s1 }
  0x11   :  { %p119_p5 = pnand %p117_p4, %p114_p3 }
  0x13   :  { %122 = shalt.err (!%p119_p5)
}
  0x14   :  { %s123_s0 = scalar_lea.vmem %s19_s20, 4096  ;;  %p128_p7 = scmp.lt.s32.totalorder %s19_s20, %s19_s20 }
  0x15   :  { %p124_p6 = scmp.ne.s32.totalorder %s19_s20, %s123_s0  ;;  %p129_p8 = scmp.lt.s32.totalorder %s123_s0, %s123_s0 }
  0x17   :  { %p130_p9 = por %p129_p8, %p128_p7 }
  0x19   :  { %p131_p10 = pnand %p130_p9, %p124_p6 }
  0x1b   :  { %134 = shalt.err (!%p131_p10)
}
  0x1c   :  { %s165_s28 = smov 128   ;;  %s166_s29 = smov 8  }
  0x1d   :  { %24 = dma.hbm_to_vmem [thread:$0]  %s227_s1, 4096, %s19_s20, [#allocation5], %s165_s28, %s165_s28, %s166_s29  }
  0x1e   :  { %159 = dma.done.wait [#allocation5], 4096  }
  0x1f   :  { %160 = vsyncadd [#allocation5], 4294963200  ;;  %s29_s4 = sld [smem:[#allocation3]]  ;;  %s91_s5 = sld [smem:[#allocation3 + $0x1]] }
  0x20   :  { %s92_s6 = sld [smem:[#allocation3 + $0x2]]  ;;  %s93_s7 = sld [smem:[#allocation3 + $0x3]] }
  0x21   :  { %s94_s8 = sld [smem:[#allocation3 + $0x4]]  ;;  %s95_s9 = sld [smem:[#allocation3 + $0x5]] }
  0x22   :  { %s96_s10 = sld [smem:[#allocation3 + $0x6]]  ;;  %s97_s11 = sld [smem:[#allocation3 + $0x7]] }
  0x23   :  { %s167_s12 = smov [#allocation7]  }
  0x24   :  { %s74_s13 = sshll.u32 %s167_s12, 4  ;;  %s207_s13 = int_to_ptr.vmem [resolvable:$true] %s74_s13 }
  0x25   :  { %s30_s14 = scalar_lea.vmem [#allocation4], %s29_s4  ;;  %s35_s15 = scalar_lea.vmem [#allocation4], %s91_s5 }
  0x26   :  { %v31_v0 = vld [vmem:[%s30_s14] sm:$0x1]  ;;  %s40_s1 = scalar_lea.vmem [#allocation4], %s92_s6  ;;  %s45_s16 = scalar_lea.vmem [#allocation4], %s93_s7 }
  0x27   :  { %v36_v1 = vld [vmem:[%s35_s15] sm:$0x1]  ;;  %32 = vst [vmem:[#allocation7] sm:$0x1] %v31_v0  ;;  %s50_s17 = scalar_lea.vmem [#allocation4], %s94_s8  ;;  %s55_s18 = scalar_lea.vmem [#allocation4], %s95_s9 }
  0x28   :  { %37 = vst [vmem:[#allocation7 + $0x1] sm:$0x1] %v36_v1  ;;  %v41_v2 = vld [vmem:[%s40_s1] sm:$0x1]  ;;  %s60_s19 = scalar_lea.vmem [#allocation4], %s96_s10  ;;  %s65_s20 = scalar_lea.vmem [#allocation4], %s97_s11 }
  0x29   :  { %v46_v3 = vld [vmem:[%s45_s16] sm:$0x1]  ;;  %42 = vst [vmem:[#allocation7 + $0x2] sm:$0x1] %v41_v2  ;;  %s135_s21 = scalar_lea.vmem %s207_s13, 128  ;;  %p140_p12 = scmp.lt.s32.totalorder %s207_s13, %s207_s13 }
  0x2a   :  { %47 = vst [vmem:[#allocation7 + $0x3] sm:$0x1] %v46_v3  ;;  %v51_v4 = vld [vmem:[%s50_s17] sm:$0x1]  ;;  %p136_p11 = scmp.ne.s32.totalorder %s207_s13, %s135_s21  ;;  %p141_p13 = scmp.lt.s32.totalorder %s135_s21, %s135_s21 }
  0x2b   :  { %v56_v5 = vld [vmem:[%s55_s18] sm:$0x1]  ;;  %52 = vst [vmem:[#allocation7 + $0x4] sm:$0x1] %v51_v4 }
  0x2c   :  { %57 = vst [vmem:[#allocation7 + $0x5] sm:$0x1] %v56_v5  ;;  %v61_v6 = vld [vmem:[%s60_s19] sm:$0x1]  ;;  %p142_p0 = por %p141_p13, %p140_p12 }
  0x2d   :  { %v66_v7 = vld [vmem:[%s65_s20] sm:$0x1]  ;;  %62 = vst [vmem:[#allocation7 + $0x6] sm:$0x1] %v61_v6 }
  0x2e   :  { %67 = vst [vmem:[#allocation7 + $0x7] sm:$0x1] %v66_v7  ;;  %p143_p1 = pnand %p142_p0, %p136_p11 }
  0x30   :  { %146 = shalt.err (!%p143_p1)
}
  0x31   :  { %s147_s24 = scalar_lea.hbm %s228_s2, 128 }
  0x32   :  { %p148_p2 = scmp.ne.s32.totalorder %s228_s2, %s147_s24  ;;  %p151_p3 = scmp.lt.u32.totalorder %s147_s24, %s228_s2 }
  0x34   :  { %p153_p4 = pnand %p151_p3, %p148_p2 }
  0x36   :  { %156 = shalt.err (!%p153_p4)
}
  0x37   :  { %77 = dma.vmem_to_hbm [thread:$0]  %s207_s13, 128, %s228_s2, [#allocation6]  }
  0x38   :  { %161 = dma.done.wait [#allocation6], 128  }
  0x39   :  { %162 = vsyncadd [#allocation6], 4294967168 }
  0x3a   :  { %81 = vsyncpa [#allocation5], 1 }
  0x3b   :  { %82 = vsyncpa [#allocation6], 1 }

</bundles_post_ra>
